<compile_context>
chip_gen: v7x
topology: tpu7x:2x2x1
jax: 0.10.0
libtpu: 0.0.40
codegen_flags: <defaults>
</compile_context>

<pallas_src>
import functools
import math

import jax
import jax.numpy as jnp
from jax.experimental import pallas as pl
from jax.experimental.pallas import tpu as pltpu

BETA = 1.9678289474987882
VOLUME_TEMP = 0.33243242379830407
EULER_GAMMA = 0.5772156649015329
SOFTPLUS_THRESHOLD = 20.0  # torch.nn.functional.softplus default threshold

INV_BETA = 1.0 / BETA
INV_VT = 1.0 / VOLUME_TEMP
OFFSET = 2.0 * EULER_GAMMA * BETA


def _round_up(x, m):
    return ((x + m - 1) // m) * m


def _pad_lane_contrib():
    """Per-lane contribution of a zero-padded lane (both boxes = [0, 0]).

    wiz = wjz = wiZ = wjZ = 0  =>  z = beta*ln2, Z = -beta*ln2,
    x = -2*beta*(ln2 + euler_gamma)  =>  contrib is a constant.
    """
    x = -2.0 * BETA * (math.log(2.0) + EULER_GAMMA)
    bx = VOLUME_TEMP * x                       # << SOFTPLUS_THRESHOLD
    sp = math.log1p(math.exp(bx)) * INV_VT
    return math.log(sp + 1e-23)


_PAD_LANE_CONTRIB = _pad_lane_contrib()


def _globe_kernel(wi_ref, wj_ref, out_ref, *, d_pad, pad_total):
    """wi_ref/wj_ref: (block_rows, 2*d_pad) f32; lanes [0,d_pad) = low corner,
    lanes [d_pad,2*d_pad) = high corner. out_ref: (block_rows, 1) f32."""
    beta = jnp.float32(BETA)
    inv_beta = jnp.float32(INV_BETA)
    vt = jnp.float32(VOLUME_TEMP)
    inv_vt = jnp.float32(INV_VT)
    thr = jnp.float32(SOFTPLUS_THRESHOLD)

    wiz = wi_ref[:, :d_pad]
    wiZ = wi_ref[:, d_pad:]
    wjz = wj_ref[:, :d_pad]
    wjZ = wj_ref[:, d_pad:]

    # Scale-free pairwise logaddexp:
    #   beta*logaddexp(a/beta, b/beta)  = max(a,b) + beta*log1p(exp(-|a-b|/beta))
    #  -beta*logaddexp(-a/beta,-b/beta) = min(a,b) - beta*log1p(exp(-|a-b|/beta))
    d_lo = jnp.abs(wiz - wjz)
    z = jnp.maximum(wiz, wjz) + beta * jnp.log1p(jnp.exp(-d_lo * inv_beta))
    d_hi = jnp.abs(wiZ - wjZ)
    Z = jnp.minimum(wiZ, wjZ) - beta * jnp.log1p(jnp.exp(-d_hi * inv_beta))

    x = Z - z - jnp.float32(OFFSET)

    # torch softplus(x, beta=vt): (1/vt)*log1p(exp(vt*x)), linear above threshold.
    bx = vt * x
    sp = jnp.where(
        bx > thr,
        x,
        jnp.log1p(jnp.exp(jnp.minimum(bx, thr))) * inv_vt,
    )

    contrib = jnp.log(sp + jnp.float32(1e-23))

    vol = jnp.sum(contrib, axis=-1, keepdims=True)
    if pad_total != 0.0:
        # Remove the constant contribution of the zero-padded lanes
        # (replaces the per-iteration iota/compare/select lane mask).
        vol = vol - jnp.float32(pad_total)

    out_ref[...] = vol


def prepare_tables(embeddings, context):
    """One-time (init-time) preparation of the parameter tables.

    Pads D up to a multiple of 128 with zeros and flattens the two corners into
    a single lane-contiguous slab per word: (V, 2, D) -> (V, 2*d_pad) f32.
    Returns (emb_slab, ctx_slab, d_valid).
    """
    V, two, D = embeddings.shape
    assert two == 2
    d_pad = _round_up(D, 128)

    def prep(t):
        t = t.astype(jnp.float32)
        if d_pad != D:
            t = jnp.pad(t, ((0, 0), (0, 0), (0, d_pad - D)))
        return t.reshape(V, 2 * d_pad)

    return prep(embeddings), prep(context), D


def globe_forward(emb_slab, ctx_slab, i, j, d_valid, *, block_n=2048):
    """emb_slab/ctx_slab: (V, 2*d_pad) f32 from prepare_tables();
    i, j: int32 arrays of identical shape; d_valid: original embedding dim."""
    orig_shape = i.shape
    i_flat = i.reshape(-1)
    j_flat = j.reshape(-1)

    slab_w = emb_slab.shape[1]
    d_pad = slab_w // 2

    # Gather the kernel-ready slabs for each (i, j) pair (plain-JAX glue).
    # TODO(synk): fuse this gather into the kernel (pl.ANY tables +
    # scalar-prefetched indices + per-tile DMA row gather) to avoid the HBM
    # round-trip of the gathered slabs.
    wi2 = emb_slab[i_flat]  # (N, 2*d_pad) f32
    wj2 = ctx_slab[j_flat]  # (N, 2*d_pad) f32
    N = wi2.shape[0]

    # --- tile sizing ---------------------------------------------------------
    bytes_per_row = slab_w * 4
    buf_budget = 24 * 1024 * 1024               # 2 inputs x 2 pipeline buffers
    budget_rows = max(8, (buf_budget // (4 * bytes_per_row)) // 8 * 8)
    min_steps = 8                               # >= 2-4 grid steps per TC (v7x)
    steps_rows = max(8, _round_up(pl.cdiv(N, min_steps), 8))
    block_rows = max(8, min(block_n, budget_rows, steps_rows))

    grid = (pl.cdiv(N, block_rows),)            # ragged last tile handled by Pallas

    pad_total = float((d_pad - d_valid) * _PAD_LANE_CONTRIB)
    kernel = functools.partial(_globe_kernel, d_pad=d_pad, pad_total=pad_total)

    cost = pl.CostEstimate(
        flops=30 * N * d_pad,
        transcendentals=7 * N * d_pad,
        bytes_accessed=2 * N * slab_w * 4 + 4 * N,
    )

    out = pl.pallas_call(
        kernel,
        out_shape=jax.ShapeDtypeStruct((N, 1), jnp.float32),
        grid_spec=pltpu.PrefetchScalarGridSpec(
            num_scalar_prefetch=0,
            grid=grid,
            in_specs=[
                pl.BlockSpec((block_rows, slab_w), lambda n: (n, 0)),
                pl.BlockSpec((block_rows, slab_w), lambda n: (n, 0)),
            ],
            out_specs=pl.BlockSpec((block_rows, 1), lambda n: (n, 0)),
        ),
        compiler_params=pltpu.CompilerParams(
            dimension_semantics=("parallel",),
            vmem_limit_bytes=40 * 1024 * 1024,
        ),
        cost_estimate=cost,
    )(wi2, wj2)

    return out[:, 0].reshape(orig_shape)


def globe_reference(embeddings, context, i, j):
    """Pure-JAX reference mirroring the PyTorch forward."""
    wi = embeddings[i.reshape(-1)]
    wj = context[j.reshape(-1)]
    beta = BETA
    z = beta * jnp.logaddexp(wi[:, 0, :] / beta, wj[:, 0, :] / beta)
    Z = -beta * jnp.logaddexp(-wi[:, 1, :] / beta, -wj[:, 1, :] / beta)
    x = Z - z - 2.0 * EULER_GAMMA * beta
    bx = VOLUME_TEMP * x
    sp = jnp.where(
        bx > SOFTPLUS_THRESHOLD,
        x,
        jnp.log1p(jnp.exp(jnp.minimum(bx, SOFTPLUS_THRESHOLD))) / VOLUME_TEMP,
    )
    return jnp.sum(jnp.log(sp + 1e-23), axis=-1).reshape(i.shape)


if __name__ == "__main__":
    key = jax.random.PRNGKey(0)
    k_emb, k_ctx, k_i, k_j = jax.random.split(key, 4)

    vocab_size = 64
    embedding_dim = 200  # module default (NOT a multiple of 128 — exercises lane padding)

    # Deterministic parameter init mirroring the module's __init__:
    #   uniform(1e-7, 0.9 - 1e-7) for the low corner, high corner = low + 0.1
    emb_low = jax.random.uniform(
        k_emb, (vocab_size, embedding_dim), jnp.float32, 1e-7, 0.9 - 1e-7)
    embeddings = jnp.stack([emb_low, emb_low + 0.1], axis=1)  # (V, 2, D)

    ctx_low = jax.random.uniform(
        k_ctx, (vocab_size, embedding_dim), jnp.float32, 1e-7, 0.9 - 1e-7)
    context = jnp.stack([ctx_low, ctx_low + 0.1], axis=1)     # (V, 2, D)

    # One-time table preparation (init-time, not per forward call).
    emb_slab, ctx_slab, d_valid = prepare_tables(embeddings, context)

    # Index pairs (i, j) — e.g. (batch=2, seq=8) co-occurrence pairs.
    i = jax.random.randint(k_i, (2, 8), 0, vocab_size, dtype=jnp.int32)
    j = jax.random.randint(k_j, (2, 8), 0, vocab_size, dtype=jnp.int32)

    score = globe_forward(emb_slab, ctx_slab, i, j, d_valid)
    score = jax.block_until_ready(score)

    ref = globe_reference(embeddings, context, i, j)
    assert score.shape == i.shape
    assert jnp.allclose(score, ref, atol=1e-4, rtol=1e-4), (score, ref)

    print("KERNEL_OK")
</pallas_src>

<mosaic_0001>
module attributes {stable_mosaic.version = 11 : i64} {
  func.func @_globe_kernel(%arg0: i32, %arg1: memref<8x512xf32, #tpu.memory_space<vmem>>, %arg2: memref<8x512xf32, #tpu.memory_space<vmem>>, %arg3: memref<8x1xf32, #tpu.memory_space<vmem>>) attributes {dimension_semantics = [#tpu.dimension_semantics<parallel>], iteration_bounds = array<i64: 2>, scalar_prefetch = 0 : i64, scratch_operands = 0 : i64, tpu.core_type = #tpu.core_type<tc>, window_params = [{transform_indices = @transform_0, window_bounds = array<i64: 8, 512>}, {transform_indices = @transform_1, window_bounds = array<i64: 8, 512>}, {transform_indices = @transform_2, window_bounds = array<i64: 8, 1>}]} {
    %c0 = arith.constant 0 : index
    %c0_0 = arith.constant 0 : index
    %0 = vector.load %arg1[%c0, %c0_0] : memref<8x512xf32, #tpu.memory_space<vmem>>, vector<8x256xf32>
    %c0_1 = arith.constant 0 : index
    %c256 = arith.constant 256 : index
    %1 = vector.load %arg1[%c0_1, %c256] : memref<8x512xf32, #tpu.memory_space<vmem>>, vector<8x256xf32>
    %c0_2 = arith.constant 0 : index
    %c0_3 = arith.constant 0 : index
    %2 = vector.load %arg2[%c0_2, %c0_3] : memref<8x512xf32, #tpu.memory_space<vmem>>, vector<8x256xf32>
    %c0_4 = arith.constant 0 : index
    %c256_5 = arith.constant 256 : index
    %3 = vector.load %arg2[%c0_4, %c256_5] : memref<8x512xf32, #tpu.memory_space<vmem>>, vector<8x256xf32>
    %4 = arith.subf %0, %2 : vector<8x256xf32>
    %5 = math.absf %4 : vector<8x256xf32>
    %6 = arith.maximumf %0, %2 : vector<8x256xf32>
    %cst = arith.constant 0.000000e+00 : f32
    %7 = vector.broadcast %cst : f32 to vector<8x256xf32>
    %8 = arith.subf %7, %5 : vector<8x256xf32>
    %cst_6 = arith.constant 0.508174241 : f32
    %9 = vector.broadcast %cst_6 : f32 to vector<8x256xf32>
    %10 = arith.mulf %8, %9 : vector<8x256xf32>
    %11 = math.exp %10 : vector<8x256xf32>
    %12 = math.log1p %11 : vector<8x256xf32>
    %cst_7 = arith.constant 1.96782899 : f32
    %13 = vector.broadcast %cst_7 : f32 to vector<8x256xf32>
    %14 = arith.mulf %13, %12 : vector<8x256xf32>
    %15 = arith.addf %6, %14 : vector<8x256xf32>
    %16 = arith.subf %1, %3 : vector<8x256xf32>
    %17 = math.absf %16 : vector<8x256xf32>
    %18 = arith.minimumf %1, %3 : vector<8x256xf32>
    %cst_8 = arith.constant 0.000000e+00 : f32
    %19 = vector.broadcast %cst_8 : f32 to vector<8x256xf32>
    %20 = arith.subf %19, %17 : vector<8x256xf32>
    %cst_9 = arith.constant 0.508174241 : f32
    %21 = vector.broadcast %cst_9 : f32 to vector<8x256xf32>
    %22 = arith.mulf %20, %21 : vector<8x256xf32>
    %23 = math.exp %22 : vector<8x256xf32>
    %24 = math.log1p %23 : vector<8x256xf32>
    %cst_10 = arith.constant 1.96782899 : f32
    %25 = vector.broadcast %cst_10 : f32 to vector<8x256xf32>
    %26 = arith.mulf %25, %24 : vector<8x256xf32>
    %27 = arith.subf %18, %26 : vector<8x256xf32>
    %28 = arith.subf %27, %15 : vector<8x256xf32>
    %cst_11 = arith.constant 2.27172327 : f32
    %29 = vector.broadcast %cst_11 : f32 to vector<8x256xf32>
    %30 = arith.subf %28, %29 : vector<8x256xf32>
    %cst_12 = arith.constant 0.332432419 : f32
    %31 = vector.broadcast %cst_12 : f32 to vector<8x256xf32>
    %32 = arith.mulf %31, %30 : vector<8x256xf32>
    %cst_13 = arith.constant 2.000000e+01 : f32
    %33 = vector.broadcast %cst_13 : f32 to vector<8x256xf32>
    %34 = arith.cmpf ogt, %32, %33 : vector<8x256xf32>
    %cst_14 = arith.constant 2.000000e+01 : f32
    %35 = vector.broadcast %cst_14 : f32 to vector<8x256xf32>
    %36 = arith.minimumf %32, %35 : vector<8x256xf32>
    %37 = math.exp %36 : vector<8x256xf32>
    %38 = math.log1p %37 : vector<8x256xf32>
    %cst_15 = arith.constant 3.008130e+00 : f32
    %39 = vector.broadcast %cst_15 : f32 to vector<8x256xf32>
    %40 = arith.mulf %38, %39 : vector<8x256xf32>
    %41 = arith.select %34, %30, %40 : vector<8x256xi1>, vector<8x256xf32>
    %cst_16 = arith.constant 9.99999999E-24 : f32
    %42 = vector.broadcast %cst_16 : f32 to vector<8x256xf32>
    %43 = arith.addf %41, %42 : vector<8x256xf32>
    %44 = math.log %43 : vector<8x256xf32>
    %cst_17 = arith.constant dense<0.000000e+00> : vector<8xf32>
    %45 = vector.multi_reduction <add>, %44, %cst_17 [1] : vector<8x256xf32> to vector<8xf32>
    %46 = vector.shape_cast %45 : vector<8xf32> to vector<8x1xf32>
    %cst_18 = arith.constant -36.3370399 : f32
    %47 = vector.broadcast %cst_18 : f32 to vector<8x1xf32>
    %48 = arith.subf %46, %47 : vector<8x1xf32>
    %c0_19 = arith.constant 0 : index
    %c0_20 = arith.constant 0 : index
    %49 = vector.load %arg3[%c0_19, %c0_20] : memref<8x1xf32, #tpu.memory_space<vmem>>, vector<8x1xf32>
    tpu.vector_store %arg3[%c0_19, %c0_20], %48 {strides = array<i32>} : memref<8x1xf32, #tpu.memory_space<vmem>>, vector<8x1xf32>,
    return
  }
  func.func @transform_0(%arg0: i32) -> (i32, i32) {
    %c0_i32 = arith.constant 0 : i32
    %c0_i32_0 = arith.constant 0 : i32
    return %arg0, %c0_i32 : i32, i32
  }
  func.func @transform_1(%arg0: i32) -> (i32, i32) {
    %c0_i32 = arith.constant 0 : i32
    %c0_i32_0 = arith.constant 0 : i32
    return %arg0, %c0_i32 : i32, i32
  }
  func.func @transform_2(%arg0: i32) -> (i32, i32) {
    %c0_i32 = arith.constant 0 : i32
    %c0_i32_0 = arith.constant 0 : i32
    return %arg0, %c0_i32 : i32, i32
  }
}

</mosaic_0001>

<bundles_post_ra>
// kernel: tpu_custom_call.1
= control target key start
LH: loop header
LB: loop body
LE: loop exit
PB: predicated region body
PF: predicated region fallthrough
CT: control target
= control target key end

     0   :  { %7 = vsyncpa [#allocation3], 0  ;;  %s815_s0 = inlined_call_operand.hbm [shape: f32[16,512], index: 0, kind: input, shape index: {}]   ;;  %s816_s1 = inlined_call_operand.hbm [shape: f32[16,512], index: 1, kind: input, shape index: {}]   ;;  %s817_s2 = inlined_call_operand.vmem [shape: f32[16,1], index: 2, kind: output, shape index: {}]  }
   0x1   :  { %9 = vsyncpa [#allocation3 + $0x1], 0 }
   0x2   :  { %10 = vsyncpa [#allocation5], 0 }
   0x3   :  { %12 = vsyncpa [#allocation5 + $0x1], 0  ;;  %s623_s9 = smov 0   ;;  %s625_s10 = smov 0  }
   0x4   :  { %s627_s11 = smov 0   ;;  %s629_s12 = smov 0  }
   0x5 LB: > { %s642_s13 = sadd.s32 4294967295, %s604_s12   ;;  %s645_s14 = sadd.s32 1, %s604_s12   ;;  %s604_s12 = sphi %s629_s12, %s831_s12   ;;  %s600_s11 = sphi %s627_s11, %s830_s11   ;;  %s596_s10 = sphi %s625_s10, %s829_s10   ;;  %s592_s9 = sphi %s623_s9, %s828_s9  }
   0x6   : > { %s22_s15 = ssub.s32 %s604_s12, %s645_s14  ;;  %s25_s16 = sadd.s32 1, %s600_s11 }
   0x7   : > { %p23_p0 = scmp.eq.s32.totalorder %s22_s15, 0  ;;  %p32_p1 = scmp.ne.s32.totalorder %s600_s11, %s596_s10 }
   0x8   : > { %p33_p2 = scmp.eq.s32.totalorder %s604_s12, 0  ;;  %p38_p3 = scmp.ne.s32.totalorder %s596_s10, %s592_s9 }
   0x9   : > { %s655_s17 = scalar_select %p23_p0, %s600_s11, %s25_s16  }
   0xa   : > { %p34_p4 = por %p33_p2, %p32_p1  ;;  %p39_p5 = scmp.eq.s32.totalorder %s642_s13, 0 }
   0xb   : > { %p445_p6 = scmp.lt.s32.totalorder %s604_s12, 2  ;;  %s664_s19 = sand.u32 1, %s600_s11  }
   0xc   : > { %p659_p7 = por %p39_p5, %p38_p3  ;;  %s417_s20 = sshll.u32 %s664_s19, 5 }
   0xd   : > { %s432_s21 = sshll.u32 %s604_s12, 9  ;;  %s118_s25 = scalar_lea.vmem [#allocation2], %s417_s20 }
   0xe   : > { %s819_s18 = scalar_select %p659_p7, 1, 0 }
   0xf   : > { %s673_s24 = scalar_lea.hbm %s815_s0, %s432_s21  ;;  %s126_s26 = sshll.u32 %s118_s25, 4  ;;  %s677_s26 = int_to_ptr.vmem [resolvable:$true] %s126_s26 }
  0x10   : > { %p679_p8 = pnand %p445_p6, %p34_p4  ;;  %s115_s28 = scalar_lea.sflag [#allocation3], %s664_s19 }
  0x11   : > { %s506_s29 = scalar_lea.hbm %s673_s24, 512  ;;  %s511_s4 = scalar_lea.hbm %s815_s0, 1024 }
  0x12   : > { %p507_p11 = scmp.ne.s32.totalorder %s673_s24, %s506_s29  ;;  %p508_p12 = pneg %p679_p8 }
  0x13   : > { %p512_p1 = scmp.lt.u32.totalorder %s673_s24, %s815_s0  ;;  %p513_p2 = scmp.lt.u32.totalorder %s511_s4, %s506_s29 }
  0x14   : > { %p509_p13 = pnand %p508_p12, %p507_p11  ;;  %p515_p4 = scmp.lt.u32.totalorder %s506_s29, %s673_s24 }
  0x15   : > { %p514_p3 = por %p513_p2, %p512_p1 }
  0x16   : > { %p510_p0 = pneg %p509_p13 }
  0x17   : > { %p516_p5 = por %p515_p4, %p514_p3 }
  0x19   : > { %p517_p6 = pnand %p516_p5, %p510_p0 }
  0x1b   : > { %520 = shalt.err (!%p517_p6)
}
  0x1c   : > { %s521_s7 = scalar_lea.vmem %s677_s26, 512  ;;  %s606_s8 = smov [#allocation2]  }
  0x1d   : > { %p522_p11 = scmp.ne.s32.totalorder %s677_s26, %s521_s7  ;;  %s526_s9 = sshll.u32 %s606_s8, 4  ;;  %s527_s9 = int_to_ptr.vmem [resolvable:$false] %s526_s9 }
  0x1e   : > { %s528_s15 = scalar_lea.vmem %s527_s9, 1024  ;;  %p529_p10 = scmp.lt.s32.totalorder %s677_s26, %s527_s9 }
  0x1f   : > { %p524_p13 = pnand %p522_p11, %p508_p12  ;;  %p530_p1 = scmp.lt.s32.totalorder %s528_s15, %s521_s7 }
  0x21   : > { %p525_p9 = pneg %p524_p13  ;;  %p531_p2 = por %p530_p1, %p529_p10 }
  0x23   : > { %p532_p3 = pnand %p531_p2, %p525_p9 }
  0x25   : > { %535 = shalt.err (!%p532_p3)
}
  0x26   : > { %441 = dma.hbm_to_vmem [thread:$0]  (!%p679_p8), %s673_s24, 512, %s677_s26, %s115_s28  }
  0x27   : > { %p821_p0 = scmp.lt.s32.totalorder %s604_s12, 3  ;;  %p822_p4 = scmp.ge.s32.totalorder %s604_s12, 1 }
  0x28   : > { %s724_s25 = scalar_lea.hbm %s816_s1, %s432_s21  ;;  %s137_s29 = scalar_lea.vmem [#allocation4], %s417_s20 }
  0x29   : > { %p715_p5 = pnand %p822_p4, %p821_p0  ;;  %s145_s30 = sshll.u32 %s137_s29, 4  ;;  %s146_s30 = int_to_ptr.vmem [resolvable:$true] %s145_s30 }
  0x2a   : > { %s134_s24 = scalar_lea.sflag [#allocation5], %s664_s19  ;;  %s536_s26 = scalar_lea.hbm %s724_s25, 512 }
  0x2b   : > { %s823_s16 = scalar_select %p715_p5, 1, 0 }
  0x2c   : > { %p537_p9 = scmp.ne.s32.totalorder %s724_s25, %s536_s26  ;;  %s541_s21 = scalar_lea.hbm %s816_s1, 1024 }
  0x2d   : > { %p542_p11 = scmp.lt.u32.totalorder %s724_s25, %s816_s1  ;;  %p543_p13 = scmp.lt.u32.totalorder %s541_s21, %s536_s26 }
  0x2e   : > { %p539_p10 = pnand %p537_p9, %p508_p12  ;;  %p545_p2 = scmp.lt.u32.totalorder %s536_s26, %s724_s25 }
  0x2f   : > { %p544_p1 = por %p543_p13, %p542_p11 }
  0x30   : > { %p540_p6 = pneg %p539_p10 }
  0x31   : > { %p546_p3 = por %p545_p2, %p544_p1 }
  0x33   : > { %p547_p0 = pnand %p546_p3, %p540_p6 }
  0x35   : > { %550 = shalt.err (!%p547_p0)
}
  0x36   : > { %s551_s19 = scalar_lea.vmem %s146_s30, 512  ;;  %s607_s20 = smov [#allocation4]  }
  0x37   : > { %p552_p4 = scmp.ne.s32.totalorder %s146_s30, %s551_s19  ;;  %s556_s5 = sshll.u32 %s607_s20, 4  ;;  %s557_s5 = int_to_ptr.vmem [resolvable:$false] %s556_s5 }
  0x38   : > { %s558_s6 = scalar_lea.vmem %s557_s5, 1024  ;;  %p559_p7 = scmp.lt.s32.totalorder %s146_s30, %s557_s5 }
  0x39   : > { %p554_p9 = pnand %p552_p4, %p508_p12  ;;  %p560_p5 = scmp.lt.s32.totalorder %s558_s6, %s551_s19 }
  0x3b   : > { %p555_p10 = pneg %p554_p9  ;;  %p561_p11 = por %p560_p5, %p559_p7 }
  0x3d   : > { %p562_p13 = pnand %p561_p11, %p555_p10 }
  0x3f   : > { %565 = shalt.err (!%p562_p13)
}
  0x40   : > { %444 = dma.hbm_to_vmem [thread:$0]  (!%p679_p8), %s724_s25, 512, %s146_s30, %s134_s24  }
  0x41   : > { %p824_p6 = scmp.ne.s32.totalorder %s823_s16, 0 }
  0x42   : > { %s156_s7 = sand.u32 (!%p824_p6), 1, %s596_s10   ;;  %p825_p12 = scmp.ne.s32.totalorder (!%p824_p6), %s819_s18, 0 }
  0x43   : > { %154 = sbr.rel (%p824_p6) target bundleno = 325 (0x145), region = 28  ;;  %s424_s8 = sshll.u32 (!%p824_p6), %s156_s7, 5 }
  0x44   : > { %s157_s9 = scalar_lea.sflag (!%p824_p6), [#allocation3], %s156_s7  ;;  %s160_s15 = scalar_lea.vmem (!%p824_p6), [#allocation2], %s424_s8 }
  0x4a   : > { %583 = dma.done.wait (%p825_p12), %s157_s9, 512  }
  0x4b   : > { %585 = vsyncadd (%p825_p12), %s157_s9, 4294966784  ;;  %s166_s22 = scalar_lea.sflag [#allocation5], %s156_s7  ;;  %s169_s23 = scalar_lea.vmem [#allocation4], %s424_s8 }
  0x4c   : > { %587 = dma.done.wait (%p825_p12), %s166_s22, 512  }
  0x4d   : > { %589 = vsyncadd (%p825_p12), %s166_s22, 4294966784  ;;  %v759_v0 = vld [vmem:[%s160_s15] sm:$0xff]  ;;  %v761_v1 = vld [vmem:[%s160_s15 + $0x8] sm:$0xff]  ;;  %p194_p7 = scmp.lt.s32.totalorder %s642_s13, 1  ;;  %vm324_vm8 = vcmask 7168  }
  0x4e   : > { %v763_v2 = vld [vmem:[%s160_s15 + $0x10] sm:$0xff]  ;;  %v765_v3 = vld [vmem:[%s160_s15 + $0x18] sm:$0xff]  ;;  %v767_v4 = vld [vmem:[%s169_s23] sm:$0xff] }
  0x4f   : > { %v769_v5 = vld [vmem:[%s169_s23 + $0x8] sm:$0xff]  ;;  %v771_v6 = vld [vmem:[%s169_s23 + $0x10] sm:$0xff]  ;;  %v773_v7 = vld [vmem:[%s169_s23 + $0x18] sm:$0xff]  ;;  %v206_v8 = vsub.f32 %v759_v0, %v767_v4  ;;  %v210_v56 = vmax.f32 %v759_v0, %v767_v4  ;;  %s833_s13 = smov (!%p194_p7, %s642_s13), 1 }
  0x50   : > { %v207_v9 = vsub.f32 %v761_v1, %v769_v5  ;;  %v242_v10 = vsub.f32 %v763_v2, %v771_v6  ;;  %v243_v11 = vsub.f32 %v765_v3, %v773_v7  ;;  %v211_v58 = vmax.f32 %v761_v1, %v769_v5  ;;  %s426_s18 = sshll.u32 %s833_s13, 3 }
  0x51   : > { %v208_v12 = vand.u32 2147483647, %v206_v8  ;;  %s197_s25 = scalar_lea.vmem %s817_s2, %s426_s18 }
  0x52   : > { %v209_v13 = vand.u32 2147483647, %v207_v9  ;;  %v244_v14 = vand.u32 2147483647, %v242_v10  ;;  %v245_v15 = vand.u32 2147483647, %v243_v11  ;;  %v246_v9 = vmin.f32 %v763_v2, %v771_v6 }
  0x53   : > { %v212_v16 = vsub.f32 0.0, %v208_v12  ;;  %v247_v12 = vmin.f32 %v765_v3, %v773_v7 }
  0x54   : > { %v213_v17 = vsub.f32 0.0, %v209_v13  ;;  %v248_v18 = vsub.f32 0.0, %v244_v14  ;;  %v249_v19 = vsub.f32 0.0, %v245_v15 }
  0x55   : > { %v214_v20 = vmul.f32 0.50817424, %v212_v16 }
  0x56   : > { %v215_v21 = vmul.f32 0.50817424, %v213_v17  ;;  %v250_v22 = vmul.f32 0.50817424, %v248_v18  ;;  %v251_v23 = vmul.f32 0.50817424, %v249_v19 }
  0x57   : > { %v216_v24 = vmul.f32 1.442695, %v214_v20 }
  0x58   : > { %v218_v25 = vmul.f32 1.442695, %v215_v21  ;;  %v252_v26 = vmul.f32 1.442695, %v250_v22  ;;  %v254_v27 = vmul.f32 1.442695, %v251_v23 }
  0x59   : > { %478 = vpow2.f32 %v216_v24 }
  0x5a   : > { %480 = vpow2.f32 %v218_v25 }
  0x5b   : > { %482 = vpow2.f32 %v252_v26 }
  0x5c   : > { %484 = vpow2.f32 %v254_v27 }
  0x63   : > { %v479_v28 = vpop.eup %478 }
  0x64   : > { %v481_v29 = vpop.eup %480  ;;  %v220_v30 = vadd.f32 1.0, %v479_v28  ;;  %v223_v35 = vmul.f32 -0.5, %v479_v28  ;;  %v226_v41 = vand.u32 2147483647, %v479_v28 }
  0x65   : > { %v483_v31 = vpop.eup %482  ;;  %v229_v32 = vadd.f32 1.0, %v481_v29  ;;  %v232_v36 = vmul.f32 -0.5, %v481_v29  ;;  %v235_v43 = vand.u32 2147483647, %v481_v29 }
  0x66   : > { %v485_v33 = vpop.eup %484  ;;  %486 = vlog2.f32 %v220_v30  ;;  %v256_v34 = vadd.f32 1.0, %v483_v31  ;;  %v259_v38 = vmul.f32 -0.5, %v483_v31  ;;  %v224_v39 = vadd.f32 1.0, %v223_v35 }
  0x67   : > { %488 = vlog2.f32 %v229_v32  ;;  %v265_v37 = vadd.f32 1.0, %v485_v33  ;;  %v268_v40 = vmul.f32 -0.5, %v485_v33  ;;  %v233_v42 = vadd.f32 1.0, %v232_v36 }
  0x68   : > { %490 = vlog2.f32 %v256_v34  ;;  %v260_v44 = vadd.f32 1.0, %v259_v38  ;;  %v262_v45 = vand.u32 2147483647, %v483_v31  ;;  %v225_v46 = vmul.f32 %v479_v28, %v224_v39 }
  0x69   : > { %492 = vlog2.f32 %v265_v37  ;;  %v269_v47 = vadd.f32 1.0, %v268_v40  ;;  %vm783_vm0 = vcmp.lt.f32.partialorder %v226_v41, 0.0004427343  ;;  %v234_v50 = vmul.f32 %v481_v29, %v233_v42 }
  0x6a   : > { %v271_v51 = vand.u32 2147483647, %v485_v33  ;;  %vm236_vm1 = vcmp.lt.f32.partialorder %v235_v43, 0.0004427343  ;;  %v261_v54 = vmul.f32 %v483_v31, %v260_v44  ;;  %vm263_vm2 = vcmp.lt.f32.partialorder %v262_v45, 0.0004427343 }
  0x6b   : > { %v270_v61 = vmul.f32 %v485_v33, %v269_v47 }
  0x6c   : > { %vm272_vm3 = vcmp.lt.f32.partialorder %v271_v51, 0.0004427343 }
  0x70   : > { %v487_v48 = vpop.eup %486 }
  0x71   : > { %v489_v52 = vpop.eup %488  ;;  %v222_v53 = vmul.f32 0.6931472, %v487_v48 }
  0x72   : > { %v491_v55 = vpop.eup %490  ;;  %v231_v57 = vmul.f32 0.6931472, %v489_v52 }
  0x73   : > { %v228_v59 = vsel %vm783_vm0, %v225_v46, %v222_v53  ;;  %v258_v60 = vmul.f32 0.6931472, %v491_v55  ;;  %v493_v62 = vpop.eup %492 }
  0x74   : > { %v237_v63 = vsel %vm236_vm1, %v234_v50, %v231_v57  ;;  %v238_v8 = vmul.f32 1.967829, %v228_v59  ;;  %v267_v0 = vmul.f32 0.6931472, %v493_v62 }
  0x75   : > { %v239_v10 = vmul.f32 1.967829, %v237_v63  ;;  %v264_v11 = vsel %vm263_vm2, %v261_v54, %v258_v60 }
  0x76   : > { %v240_v4 = vadd.f32 %v238_v8, %v210_v56  ;;  %v274_v1 = vmul.f32 1.967829, %v264_v11  ;;  %v273_v5 = vsel %vm272_vm3, %v270_v61, %v267_v0 }
  0x77   : > { %v241_v13 = vadd.f32 %v239_v10, %v211_v58  ;;  %v275_v14 = vmul.f32 1.967829, %v273_v5 }
  0x78   : > { %v276_v15 = vsub.f32 %v246_v9, %v274_v1 }
  0x79   : > { %v277_v16 = vsub.f32 %v247_v12, %v275_v14 }
  0x7a   : > { %v278_v17 = vsub.f32 %v276_v15, %v240_v4 }
  0x7b   : > { %v279_v18 = vsub.f32 %v277_v16, %v241_v13 }
  0x7c   : > { %v427_v19 = vadd.f32 -2.2717233, %v278_v17 }
  0x7d   : > { %v428_v20 = vadd.f32 -2.2717233, %v279_v18 }
  0x7e   : > { %v282_v21 = vmul.f32 0.33243242, %v427_v19 }
  0x7f   : > { %v283_v2 = vmul.f32 0.33243242, %v428_v20 }
  0x80   : > { %v286_v6 = vmin.f32 %v282_v21, 20.0  ;;  %vm284_vm6 = vcmp.gt.f32.partialorder %v282_v21, 20.0 }
  0x81   : > { %v287_v22 = vmin.f32 %v283_v2, 20.0  ;;  %vm285_vm7 = vcmp.gt.f32.partialorder %v283_v2, 20.0 }
  0x82   : > { %v288_v23 = vmul.f32 1.442695, %v286_v6 }
  0x83   : > { %v290_v24 = vmul.f32 1.442695, %v287_v22 }
  0x84   : > { %494 = vpow2.f32 %v288_v23 }
  0x85   : > { %496 = vpow2.f32 %v290_v24 }
  0x8e   : > { %v495_v25 = vpop.eup %494 }
  0x8f   : > { %v292_v3 = vadd.f32 1.0, %v495_v25  ;;  %v497_v7 = vpop.eup %496  ;;  %v295_v27 = vmul.f32 -0.5, %v495_v25  ;;  %v298_v30 = vand.u32 2147483647, %v495_v25 }
  0x90   : > { %v301_v26 = vadd.f32 1.0, %v497_v7  ;;  %v304_v28 = vmul.f32 -0.5, %v497_v7  ;;  %v307_v32 = vand.u32 2147483647, %v497_v7 }
  0x91   : > { %498 = vlog2.f32 %v292_v3  ;;  %v296_v29 = vadd.f32 1.0, %v295_v27  ;;  %vm299_vm4 = vcmp.lt.f32.partialorder %v298_v30, 0.0004427343 }
  0x92   : > { %500 = vlog2.f32 %v301_v26  ;;  %v305_v31 = vadd.f32 1.0, %v304_v28  ;;  %vm308_vm5 = vcmp.lt.f32.partialorder %v307_v32, 0.0004427343 }
  0x93   : > { %v297_v33 = vmul.f32 %v495_v25, %v296_v29 }
  0x94   : > { %v306_v36 = vmul.f32 %v497_v7, %v305_v31 }
  0x9b   : > { %v499_v34 = vpop.eup %498 }
  0x9c   : > { %v294_v35 = vmul.f32 0.6931472, %v499_v34  ;;  %v501_v37 = vpop.eup %500 }
  0x9d   : > { %v303_v39 = vmul.f32 0.6931472, %v501_v37 }
  0x9e   : > { %v300_v38 = vsel %vm299_vm4, %v297_v33, %v294_v35 }
  0x9f   : > { %v310_v40 = vmul.f32 3.00813, %v300_v38  ;;  %v309_v41 = vsel %vm308_vm5, %v306_v36, %v303_v39 }
  0xa0   : > { %v311_v42 = vmul.f32 3.00813, %v309_v41 }
  0xa1   : > { %v312_v43 = vsel %vm284_vm6, %v427_v19, %v310_v40 }
  0xa2   : > { %v314_v44 = vadd.f32 1e-23, %v312_v43  ;;  %v313_v45 = vsel %vm285_vm7, %v428_v20, %v311_v42 }
  0xa3   : > { %v315_v46 = vadd.f32 1e-23, %v313_v45 }
  0xa4   : > { %502 = vlog2.f32 %v314_v44 }
  0xa5   : > { %504 = vlog2.f32 %v315_v46 }
  0xae   : > { %v503_v47 = vpop.eup %502 }
  0xaf   : > { %v317_v48 = vmul.f32 0.6931472, %v503_v47  ;;  %v505_v49 = vpop.eup %504 }
  0xb0   : > { %v319_v50 = vmul.f32 0.6931472, %v505_v49 }
  0xb2   : > { %v320_v51 = vadd.f32 %v319_v50, %v317_v48 }
  0xb4   : > { %321 = vadd.xlane.f32.xlu0 %v320_v51 }
 0x141   : > { %v322_v52 = vpop.xlane.xlu0 %321 }
 0x142   : > { %v429_v53 = vadd.f32 36.33704, %v322_v52 }
 0x144   : > { %325 = vst.msk [vmem:[%s197_s25] sm:$0xff] %vm324_vm8, %v429_v53 }
 0x145 PF: > { %p15_p8 = scmp.ge.s32.totalorder %s645_s14, 4   ;;  %s828_s9 = smov %s596_s10 }
 0x146   : > { %s829_s10 = smov %s600_s11  ;;  %s830_s11 = smov %s655_s17 }
 0x147   : > { %s831_s12 = smov %s645_s14  ;;  %17 = sbr.rel (!%p15_p8) target bundleno = 5 (0x5), region = 81 }
 0x14e   :  { %345 = vsyncpa [#allocation3], 1 }
 0x14f   :  { %347 = vsyncpa [#allocation3 + $0x1], 1 }
 0x150   :  { %348 = vsyncpa [#allocation5], 1 }
 0x151   :  { %350 = vsyncpa [#allocation5 + $0x1], 1 }

</bundles_post_ra>
